<compile_context>
chip_gen: v7x
topology: tpu7x:2x2x1
jax: 0.10.0
libtpu: 0.0.40
codegen_flags: <defaults>
</compile_context>

<pallas_src>
import functools

import jax
import jax.numpy as jnp
from jax.experimental import pallas as pl
from jax.experimental.pallas import tpu as pltpu

_LANE = 128
_TARGET_X_BYTES = 1 << 20          # ~1 MiB x slab per grid step
_VMEM_BUDGET = 40 * (1 << 20)      # tile-sizing budget
_VMEM_LIMIT = 48 * (1 << 20)       # explicit scoped-VMEM limit (ok on v5e/v6e/v7x)


def _round_up(n: int, m: int) -> int:
    return ((n + m - 1) // m) * m


def _cdiv(a: int, b: int) -> int:
    return -(-a // b)


def _vmem_tile_bytes(shape, dtype) -> int:
    """VMEM footprint of a tile, including lane (128) and sublane padding."""
    itemsize = jnp.dtype(dtype).itemsize
    sub = 8 * max(1, 4 // itemsize)            # 8 rows for f32, 16 for bf16
    if len(shape) == 1:
        return _round_up(int(shape[0]), _LANE) * itemsize
    lead = 1
    for d in shape[:-2]:
        lead *= int(d)
    return lead * _round_up(int(shape[-2]), sub) * _round_up(int(shape[-1]), _LANE) * itemsize


def _pick_o_tile(o_pad: int) -> int:
    """Largest multiple of 128 that divides o_pad and is <= 2048."""
    to = min(o_pad, 2048)
    to = (to // _LANE) * _LANE
    while to > _LANE and o_pad % to != 0:
        to -= _LANE
    return max(to, _LANE)


def _sentence_maxpool_kernel(x_ref, w_ref, b_ref, o_ref, *, relu, s_chunk):
    # x_ref: (TB, S, D) ; w_ref: (D, TO) ; b_ref: (1, TO) ; o_ref: (TB, TO)
    TB, S, D = x_ref.shape
    TO = o_ref.shape[-1]
    w = w_ref[...]

    # Running max over the sequence: per-chunk matmul + elementwise maximum.
    # Keeps the live intermediate at (TB, TO) instead of (TB*S, TO).
    acc = None
    for s0 in range(0, S, s_chunk):
        cs = min(s_chunk, S - s0)
        if cs == 1:
            xs = x_ref[:, s0, :]                                       # (TB, D)
            y = jnp.dot(xs, w, preferred_element_type=jnp.float32)     # (TB, TO)
        else:
            # cs matches the sublane packing (8 f32 / 16 bf16) so this collapse is free.
            xs = x_ref[:, s0:s0 + cs, :].reshape(TB * cs, D)
            y = jnp.dot(xs, w, preferred_element_type=jnp.float32)     # (TB*cs, TO)
            y = jnp.max(y.reshape(TB, cs, TO), axis=1)                 # (TB, TO)
        acc = y if acc is None else jnp.maximum(acc, y)

    # Bias hoisted past the max: max_s(xW + b) == max_s(xW) + b (b const per column).
    acc = acc + b_ref[...].astype(jnp.float32)
    if relu:
        acc = jnp.maximum(acc, 0.0)
    o_ref[...] = acc.astype(o_ref.dtype)


def sentence_maxpool(x, w, b, *, relu=True, matmul_dtype=jnp.bfloat16):
    """x: (B, S, D); w: (D, O) (torch Linear weight, transposed); b: (O,) -> (B, O).

    matmul_dtype: dtype of the MXU operands (accumulation is always f32).
    Pass None to keep the input dtype (bit-faithful f32 path).
    """
    B, S, D = x.shape
    O = w.shape[1]
    out_dtype = x.dtype
    mm_dtype = jnp.dtype(x.dtype) if matmul_dtype is None else jnp.dtype(matmul_dtype)
    x_itemsize = mm_dtype.itemsize

    # ---- output tiling (lane-dense, unmasked stores) -------------------------
    O_pad = _round_up(O, _LANE)
    TO = _pick_o_tile(O_pad)
    n_o = O_pad // TO

    # ---- batch tile: sized for the HBM DMA, not for MXU M --------------------
    TB = _round_up(_cdiv(_TARGET_X_BYTES, S * D * x_itemsize), 8)
    TB = int(min(max(TB, 8), 1024))
    TB = min(TB, _round_up(B, 8))
    if B > 8:
        # v7x: keep >= 2 batch grid steps so both TensorCores get work.
        TB = min(TB, _round_up(_cdiv(B, 2), 8))

    # ---- VMEM budgeting (lane/sublane padded tile sizes) ----------------------
    def vmem_estimate(tb):
        x_buf = _vmem_tile_bytes((tb, S, D), mm_dtype)       # D<128 pads to 128 lanes
        w_buf = _vmem_tile_bytes((D, TO), mm_dtype)
        b_buf = _vmem_tile_bytes((1, TO), jnp.float32)
        o_buf = _vmem_tile_bytes((tb, TO), out_dtype)
        acc_tmp = 2 * tb * TO * 4                            # f32 acc + matmul temp
        wb_bufs = 1 if n_o == 1 else 2                       # single-buffered if resident
        return 2 * x_buf + wb_bufs * (w_buf + b_buf) + 2 * o_buf + acc_tmp

    while TB > 8 and vmem_estimate(TB) > _VMEM_BUDGET:
        TB = max(8, _round_up(TB // 2, 8))

    B_pad = _round_up(B, TB)
    n_b = B_pad // TB

    # ---- sequence chunking for the in-kernel running max ---------------------
    if S <= 16:
        s_chunk = 1
    else:
        s_chunk = 16 if x_itemsize == 2 else 8   # match sublane packing -> free collapse

    # ---- padding + dtype prep (padded rows/cols are sliced off below) --------
    x_p = x if B_pad == B else jnp.pad(x, ((0, B_pad - B), (0, 0), (0, 0)))
    w_p = w if O_pad == O else jnp.pad(w, ((0, 0), (0, O_pad - O)))
    x_p = x_p.astype(mm_dtype)
    w_p = w_p.astype(mm_dtype)
    b_p = (b if O_pad == O else jnp.pad(b, (0, O_pad - O))).reshape(1, O_pad)
    b_p = b_p.astype(jnp.float32)

    kernel = functools.partial(_sentence_maxpool_kernel, relu=relu, s_chunk=s_chunk)

    cost = pl.CostEstimate(
        flops=2 * B_pad * S * D * O_pad,
        transcendentals=0,
        bytes_accessed=(n_o * B_pad * S * D * x_itemsize
                        + D * O_pad * x_itemsize
                        + O_pad * 4
                        + B_pad * O_pad * jnp.dtype(out_dtype).itemsize),
    )

    def run(single_buffer_consts: bool):
        if single_buffer_consts:
            # Grid-invariant blocks: double-buffering them is pure VMEM waste.
            w_spec = pl.BlockSpec((D, TO), lambda o, i: (0, o),
                                  pipeline_mode=pl.Buffered(1))
            b_spec = pl.BlockSpec((1, TO), lambda o, i: (0, o),
                                  pipeline_mode=pl.Buffered(1))
        else:
            w_spec = pl.BlockSpec((D, TO), lambda o, i: (0, o))
            b_spec = pl.BlockSpec((1, TO), lambda o, i: (0, o))

        return pl.pallas_call(
            kernel,
            out_shape=jax.ShapeDtypeStruct((B_pad, O_pad), out_dtype),
            grid_spec=pltpu.PrefetchScalarGridSpec(
                num_scalar_prefetch=0,
                # Batch axis innermost: each weight column-tile stays resident
                # across all batch tiles.
                grid=(n_o, n_b),
                in_specs=[
                    pl.BlockSpec((TB, S, D), lambda o, i: (i, 0, 0)),   # x slab
                    w_spec,                                             # weight tile
                    b_spec,                                             # bias tile
                ],
                out_specs=pl.BlockSpec((TB, TO), lambda o, i: (i, o)),
            ),
            compiler_params=pltpu.CompilerParams(
                dimension_semantics=("parallel", "parallel"),
                vmem_limit_bytes=_VMEM_LIMIT,
            ),
            cost_estimate=cost,
        )(x_p, w_p, b_p)

    if n_o == 1:
        # Only single-buffer when the weight/bias block index is truly constant.
        try:
            out = run(True)
        except Exception:  # older jax without pipeline_mode / Buffered(1) support
            out = run(False)
    else:
        out = run(False)

    return out[:B, :O]


def reference(x, w, b, relu=True):
    y = jnp.einsum("bsd,do->bso", x, w) + b
    y = jnp.max(y, axis=1)
    if relu:
        y = jnp.maximum(y, 0.0)
    return y


if __name__ == "__main__":
    # Small, deterministic config: word_dimension=32, output_dim=64
    B, S, D, O = 2, 8, 32, 64
    key = jax.random.PRNGKey(0)
    kx, kw, kb = jax.random.split(key, 3)

    x = jax.random.normal(kx, (B, S, D), dtype=jnp.float32)
    # nn.Linear(word_dim, output_dim): torch weight is (O, D); store transposed (D, O)
    w = jax.random.normal(kw, (D, O), dtype=jnp.float32) * 0.1
    b = jax.random.normal(kb, (O,), dtype=jnp.float32) * 0.1

    # 1) Bit-faithful f32 path vs f32 reference (tight tolerance).
    out_f32 = jax.block_until_ready(sentence_maxpool(x, w, b, relu=True, matmul_dtype=None))
    ref_f32 = reference(x, w, b, relu=True)
    assert out_f32.shape == (B, O)
    assert jnp.allclose(out_f32, ref_f32, atol=1e-5, rtol=1e-5), "f32 path mismatch"

    # 2) Default path (bf16 MXU operands, f32 accumulation) vs bf16-rounded reference.
    out_bf = jax.block_until_ready(sentence_maxpool(x, w, b, relu=True))
    x_r = x.astype(jnp.bfloat16).astype(jnp.float32)
    w_r = w.astype(jnp.bfloat16).astype(jnp.float32)
    ref_bf = reference(x_r, w_r, b, relu=True)
    assert out_bf.shape == (B, O)
    assert jnp.allclose(out_bf, ref_bf, atol=2e-3, rtol=2e-3), "bf16 path mismatch"

    print("KERNEL_OK")
</pallas_src>

<mosaic_0001>
module attributes {stable_mosaic.version = 11 : i64} {
  func.func @_sentence_maxpool_kernel(%arg0: i32, %arg1: i32, %arg2: memref<8x8x32xf32, #tpu.memory_space<vmem>>, %arg3: memref<32x128xf32, #tpu.memory_space<vmem>>, %arg4: memref<1x128xf32, #tpu.memory_space<vmem>>, %arg5: memref<8x128xf32, #tpu.memory_space<vmem>>) attributes {dimension_semantics = [#tpu.dimension_semantics<parallel>, #tpu.dimension_semantics<parallel>], iteration_bounds = array<i64: 1, 1>, scalar_prefetch = 0 : i64, scratch_operands = 0 : i64, tpu.core_type = #tpu.core_type<tc>, window_params = [{transform_indices = @transform_0, window_bounds = array<i64: 8, 8, 32>}, {pipeline_mode = #tpu.pipeline_mode<synchronous>, transform_indices = @transform_1, window_bounds = array<i64: 32, 128>}, {pipeline_mode = #tpu.pipeline_mode<synchronous>, transform_indices = @transform_2, window_bounds = array<i64: 1, 128>}, {transform_indices = @transform_3, window_bounds = array<i64: 8, 128>}]} {
    %c0 = arith.constant 0 : index
    %c0_0 = arith.constant 0 : index
    %0 = vector.load %arg3[%c0, %c0_0] : memref<32x128xf32, #tpu.memory_space<vmem>>, vector<32x128xf32>
    %c0_1 = arith.constant 0 : index
    %c0_2 = arith.constant 0 : index
    %c0_3 = arith.constant 0 : index
    %1 = vector.load %arg2[%c0_1, %c0_2, %c0_3] : memref<8x8x32xf32, #tpu.memory_space<vmem>>, vector<8x1x32xf32>
    %2 = vector.shape_cast %1 : vector<8x1x32xf32> to vector<8x32xf32>
    %cst = arith.constant dense<0.000000e+00> : vector<8x128xf32>
    %3 = tpu.matmul %2, %0, %cst {dimension_numbers = #tpu.dot_dimension_numbers<[1], [0], [0], [1], [0, 0, 1, 1], [], []>} : vector<8x32xf32>, vector<32x128xf32>, vector<8x128xf32> -> vector<8x128xf32>
    %c0_4 = arith.constant 0 : index
    %c1 = arith.constant 1 : index
    %c0_5 = arith.constant 0 : index
    %4 = vector.load %arg2[%c0_4, %c1, %c0_5] : memref<8x8x32xf32, #tpu.memory_space<vmem>>, vector<8x1x32xf32>
    %5 = vector.shape_cast %4 : vector<8x1x32xf32> to vector<8x32xf32>
    %cst_6 = arith.constant dense<0.000000e+00> : vector<8x128xf32>
    %6 = tpu.matmul %5, %0, %cst_6 {dimension_numbers = #tpu.dot_dimension_numbers<[1], [0], [0], [1], [0, 0, 1, 1], [], []>} : vector<8x32xf32>, vector<32x128xf32>, vector<8x128xf32> -> vector<8x128xf32>
    %7 = arith.maximumf %3, %6 : vector<8x128xf32>
    %c0_7 = arith.constant 0 : index
    %c2 = arith.constant 2 : index
    %c0_8 = arith.constant 0 : index
    %8 = vector.load %arg2[%c0_7, %c2, %c0_8] : memref<8x8x32xf32, #tpu.memory_space<vmem>>, vector<8x1x32xf32>
    %9 = vector.shape_cast %8 : vector<8x1x32xf32> to vector<8x32xf32>
    %cst_9 = arith.constant dense<0.000000e+00> : vector<8x128xf32>
    %10 = tpu.matmul %9, %0, %cst_9 {dimension_numbers = #tpu.dot_dimension_numbers<[1], [0], [0], [1], [0, 0, 1, 1], [], []>} : vector<8x32xf32>, vector<32x128xf32>, vector<8x128xf32> -> vector<8x128xf32>
    %11 = arith.maximumf %7, %10 : vector<8x128xf32>
    %c0_10 = arith.constant 0 : index
    %c3 = arith.constant 3 : index
    %c0_11 = arith.constant 0 : index
    %12 = vector.load %arg2[%c0_10, %c3, %c0_11] : memref<8x8x32xf32, #tpu.memory_space<vmem>>, vector<8x1x32xf32>
    %13 = vector.shape_cast %12 : vector<8x1x32xf32> to vector<8x32xf32>
    %cst_12 = arith.constant dense<0.000000e+00> : vector<8x128xf32>
    %14 = tpu.matmul %13, %0, %cst_12 {dimension_numbers = #tpu.dot_dimension_numbers<[1], [0], [0], [1], [0, 0, 1, 1], [], []>} : vector<8x32xf32>, vector<32x128xf32>, vector<8x128xf32> -> vector<8x128xf32>
    %15 = arith.maximumf %11, %14 : vector<8x128xf32>
    %c0_13 = arith.constant 0 : index
    %c4 = arith.constant 4 : index
    %c0_14 = arith.constant 0 : index
    %16 = vector.load %arg2[%c0_13, %c4, %c0_14] : memref<8x8x32xf32, #tpu.memory_space<vmem>>, vector<8x1x32xf32>
    %17 = vector.shape_cast %16 : vector<8x1x32xf32> to vector<8x32xf32>
    %cst_15 = arith.constant dense<0.000000e+00> : vector<8x128xf32>
    %18 = tpu.matmul %17, %0, %cst_15 {dimension_numbers = #tpu.dot_dimension_numbers<[1], [0], [0], [1], [0, 0, 1, 1], [], []>} : vector<8x32xf32>, vector<32x128xf32>, vector<8x128xf32> -> vector<8x128xf32>
    %19 = arith.maximumf %15, %18 : vector<8x128xf32>
    %c0_16 = arith.constant 0 : index
    %c5 = arith.constant 5 : index
    %c0_17 = arith.constant 0 : index
    %20 = vector.load %arg2[%c0_16, %c5, %c0_17] : memref<8x8x32xf32, #tpu.memory_space<vmem>>, vector<8x1x32xf32>
    %21 = vector.shape_cast %20 : vector<8x1x32xf32> to vector<8x32xf32>
    %cst_18 = arith.constant dense<0.000000e+00> : vector<8x128xf32>
    %22 = tpu.matmul %21, %0, %cst_18 {dimension_numbers = #tpu.dot_dimension_numbers<[1], [0], [0], [1], [0, 0, 1, 1], [], []>} : vector<8x32xf32>, vector<32x128xf32>, vector<8x128xf32> -> vector<8x128xf32>
    %23 = arith.maximumf %19, %22 : vector<8x128xf32>
    %c0_19 = arith.constant 0 : index
    %c6 = arith.constant 6 : index
    %c0_20 = arith.constant 0 : index
    %24 = vector.load %arg2[%c0_19, %c6, %c0_20] : memref<8x8x32xf32, #tpu.memory_space<vmem>>, vector<8x1x32xf32>
    %25 = vector.shape_cast %24 : vector<8x1x32xf32> to vector<8x32xf32>
    %cst_21 = arith.constant dense<0.000000e+00> : vector<8x128xf32>
    %26 = tpu.matmul %25, %0, %cst_21 {dimension_numbers = #tpu.dot_dimension_numbers<[1], [0], [0], [1], [0, 0, 1, 1], [], []>} : vector<8x32xf32>, vector<32x128xf32>, vector<8x128xf32> -> vector<8x128xf32>
    %27 = arith.maximumf %23, %26 : vector<8x128xf32>
    %c0_22 = arith.constant 0 : index
    %c7 = arith.constant 7 : index
    %c0_23 = arith.constant 0 : index
    %28 = vector.load %arg2[%c0_22, %c7, %c0_23] : memref<8x8x32xf32, #tpu.memory_space<vmem>>, vector<8x1x32xf32>
    %29 = vector.shape_cast %28 : vector<8x1x32xf32> to vector<8x32xf32>
    %cst_24 = arith.constant dense<0.000000e+00> : vector<8x128xf32>
    %30 = tpu.matmul %29, %0, %cst_24 {dimension_numbers = #tpu.dot_dimension_numbers<[1], [0], [0], [1], [0, 0, 1, 1], [], []>} : vector<8x32xf32>, vector<32x128xf32>, vector<8x128xf32> -> vector<8x128xf32>
    %31 = arith.maximumf %27, %30 : vector<8x128xf32>
    %c0_25 = arith.constant 0 : index
    %c0_26 = arith.constant 0 : index
    %32 = vector.load %arg4[%c0_25, %c0_26] : memref<1x128xf32, #tpu.memory_space<vmem>>, vector<1x128xf32>
    %33 = vector.broadcast %32 : vector<1x128xf32> to vector<8x128xf32>
    %34 = arith.addf %31, %33 : vector<8x128xf32>
    %cst_27 = arith.constant 0.000000e+00 : f32
    %35 = vector.broadcast %cst_27 : f32 to vector<8x128xf32>
    %36 = arith.maximumf %34, %35 : vector<8x128xf32>
    %c0_28 = arith.constant 0 : index
    %c0_29 = arith.constant 0 : index
    %37 = vector.load %arg5[%c0_28, %c0_29] : memref<8x128xf32, #tpu.memory_space<vmem>>, vector<8x128xf32>
    tpu.vector_store %arg5[%c0_28, %c0_29], %36 {strides = array<i32>} : memref<8x128xf32, #tpu.memory_space<vmem>>, vector<8x128xf32>,
    return
  }
  func.func @transform_0(%arg0: i32, %arg1: i32) -> (i32, i32, i32) {
    %c0_i32 = arith.constant 0 : i32
    %c0_i32_0 = arith.constant 0 : i32
    %c0_i32_1 = arith.constant 0 : i32
    return %arg1, %c0_i32, %c0_i32_0 : i32, i32, i32
  }
  func.func @transform_1(%arg0: i32, %arg1: i32) -> (i32, i32) {
    %c0_i32 = arith.constant 0 : i32
    %c0_i32_0 = arith.constant 0 : i32
    return %c0_i32, %arg0 : i32, i32
  }
  func.func @transform_2(%arg0: i32, %arg1: i32) -> (i32, i32) {
    %c0_i32 = arith.constant 0 : i32
    %c0_i32_0 = arith.constant 0 : i32
    return %c0_i32, %arg0 : i32, i32
  }
  func.func @transform_3(%arg0: i32, %arg1: i32) -> (i32, i32) {
    %c0_i32 = arith.constant 0 : i32
    return %arg1, %arg0 : i32, i32
  }
}

module attributes {stable_mosaic.version = 11 : i64} {
  func.func @_sentence_maxpool_kernel(%arg0: i32, %arg1: i32, %arg2: memref<8x8x32xf32, #tpu.memory_space<vmem>>, %arg3: memref<32x128xf32, #tpu.memory_space<vmem>>, %arg4: memref<1x128xf32, #tpu.memory_space<vmem>>, %arg5: memref<8x128xf32, #tpu.memory_space<vmem>>) attributes {dimension_semantics = [#tpu.dimension_semantics<parallel>, #tpu.dimension_semantics<parallel>], iteration_bounds = array<i64: 1, 1>, scalar_prefetch = 0 : i64, scratch_operands = 0 : i64, tpu.core_type = #tpu.core_type<tc>, window_params = [{transform_indices = @transform_0, window_bounds = array<i64: 8, 8, 32>}, {transform_indices = @transform_1, window_bounds = array<i64: 32, 128>}, {transform_indices = @transform_2, window_bounds = array<i64: 1, 128>}, {transform_indices = @transform_3, window_bounds = array<i64: 8, 128>}]} {
    %c0 = arith.constant 0 : index
    %c0_0 = arith.constant 0 : index
    %0 = vector.load %arg3[%c0, %c0_0] : memref<32x128xf32, #tpu.memory_space<vmem>>, vector<32x128xf32>
    %c0_1 = arith.constant 0 : index
    %c0_2 = arith.constant 0 : index
    %c0_3 = arith.constant 0 : index
    %1 = vector.load %arg2[%c0_1, %c0_2, %c0_3] : memref<8x8x32xf32, #tpu.memory_space<vmem>>, vector<8x1x32xf32>
    %2 = vector.shape_cast %1 : vector<8x1x32xf32> to vector<8x32xf32>
    %cst = arith.constant dense<0.000000e+00> : vector<8x128xf32>
    %3 = tpu.matmul %2, %0, %cst {dimension_numbers = #tpu.dot_dimension_numbers<[1], [0], [0], [1], [0, 0, 1, 1], [], []>} : vector<8x32xf32>, vector<32x128xf32>, vector<8x128xf32> -> vector<8x128xf32>
    %c0_4 = arith.constant 0 : index
    %c1 = arith.constant 1 : index
    %c0_5 = arith.constant 0 : index
    %4 = vector.load %arg2[%c0_4, %c1, %c0_5] : memref<8x8x32xf32, #tpu.memory_space<vmem>>, vector<8x1x32xf32>
    %5 = vector.shape_cast %4 : vector<8x1x32xf32> to vector<8x32xf32>
    %cst_6 = arith.constant dense<0.000000e+00> : vector<8x128xf32>
    %6 = tpu.matmul %5, %0, %cst_6 {dimension_numbers = #tpu.dot_dimension_numbers<[1], [0], [0], [1], [0, 0, 1, 1], [], []>} : vector<8x32xf32>, vector<32x128xf32>, vector<8x128xf32> -> vector<8x128xf32>
    %7 = arith.maximumf %3, %6 : vector<8x128xf32>
    %c0_7 = arith.constant 0 : index
    %c2 = arith.constant 2 : index
    %c0_8 = arith.constant 0 : index
    %8 = vector.load %arg2[%c0_7, %c2, %c0_8] : memref<8x8x32xf32, #tpu.memory_space<vmem>>, vector<8x1x32xf32>
    %9 = vector.shape_cast %8 : vector<8x1x32xf32> to vector<8x32xf32>
    %cst_9 = arith.constant dense<0.000000e+00> : vector<8x128xf32>
    %10 = tpu.matmul %9, %0, %cst_9 {dimension_numbers = #tpu.dot_dimension_numbers<[1], [0], [0], [1], [0, 0, 1, 1], [], []>} : vector<8x32xf32>, vector<32x128xf32>, vector<8x128xf32> -> vector<8x128xf32>
    %11 = arith.maximumf %7, %10 : vector<8x128xf32>
    %c0_10 = arith.constant 0 : index
    %c3 = arith.constant 3 : index
    %c0_11 = arith.constant 0 : index
    %12 = vector.load %arg2[%c0_10, %c3, %c0_11] : memref<8x8x32xf32, #tpu.memory_space<vmem>>, vector<8x1x32xf32>
    %13 = vector.shape_cast %12 : vector<8x1x32xf32> to vector<8x32xf32>
    %cst_12 = arith.constant dense<0.000000e+00> : vector<8x128xf32>
    %14 = tpu.matmul %13, %0, %cst_12 {dimension_numbers = #tpu.dot_dimension_numbers<[1], [0], [0], [1], [0, 0, 1, 1], [], []>} : vector<8x32xf32>, vector<32x128xf32>, vector<8x128xf32> -> vector<8x128xf32>
    %15 = arith.maximumf %11, %14 : vector<8x128xf32>
    %c0_13 = arith.constant 0 : index
    %c4 = arith.constant 4 : index
    %c0_14 = arith.constant 0 : index
    %16 = vector.load %arg2[%c0_13, %c4, %c0_14] : memref<8x8x32xf32, #tpu.memory_space<vmem>>, vector<8x1x32xf32>
    %17 = vector.shape_cast %16 : vector<8x1x32xf32> to vector<8x32xf32>
    %cst_15 = arith.constant dense<0.000000e+00> : vector<8x128xf32>
    %18 = tpu.matmul %17, %0, %cst_15 {dimension_numbers = #tpu.dot_dimension_numbers<[1], [0], [0], [1], [0, 0, 1, 1], [], []>} : vector<8x32xf32>, vector<32x128xf32>, vector<8x128xf32> -> vector<8x128xf32>
    %19 = arith.maximumf %15, %18 : vector<8x128xf32>
    %c0_16 = arith.constant 0 : index
    %c5 = arith.constant 5 : index
    %c0_17 = arith.constant 0 : index
    %20 = vector.load %arg2[%c0_16, %c5, %c0_17] : memref<8x8x32xf32, #tpu.memory_space<vmem>>, vector<8x1x32xf32>
    %21 = vector.shape_cast %20 : vector<8x1x32xf32> to vector<8x32xf32>
    %cst_18 = arith.constant dense<0.000000e+00> : vector<8x128xf32>
    %22 = tpu.matmul %21, %0, %cst_18 {dimension_numbers = #tpu.dot_dimension_numbers<[1], [0], [0], [1], [0, 0, 1, 1], [], []>} : vector<8x32xf32>, vector<32x128xf32>, vector<8x128xf32> -> vector<8x128xf32>
    %23 = arith.maximumf %19, %22 : vector<8x128xf32>
    %c0_19 = arith.constant 0 : index
    %c6 = arith.constant 6 : index
    %c0_20 = arith.constant 0 : index
    %24 = vector.load %arg2[%c0_19, %c6, %c0_20] : memref<8x8x32xf32, #tpu.memory_space<vmem>>, vector<8x1x32xf32>
    %25 = vector.shape_cast %24 : vector<8x1x32xf32> to vector<8x32xf32>
    %cst_21 = arith.constant dense<0.000000e+00> : vector<8x128xf32>
    %26 = tpu.matmul %25, %0, %cst_21 {dimension_numbers = #tpu.dot_dimension_numbers<[1], [0], [0], [1], [0, 0, 1, 1], [], []>} : vector<8x32xf32>, vector<32x128xf32>, vector<8x128xf32> -> vector<8x128xf32>
    %27 = arith.maximumf %23, %26 : vector<8x128xf32>
    %c0_22 = arith.constant 0 : index
    %c7 = arith.constant 7 : index
    %c0_23 = arith.constant 0 : index
    %28 = vector.load %arg2[%c0_22, %c7, %c0_23] : memref<8x8x32xf32, #tpu.memory_space<vmem>>, vector<8x1x32xf32>
    %29 = vector.shape_cast %28 : vector<8x1x32xf32> to vector<8x32xf32>
    %cst_24 = arith.constant dense<0.000000e+00> : vector<8x128xf32>
    %30 = tpu.matmul %29, %0, %cst_24 {dimension_numbers = #tpu.dot_dimension_numbers<[1], [0], [0], [1], [0, 0, 1, 1], [], []>} : vector<8x32xf32>, vector<32x128xf32>, vector<8x128xf32> -> vector<8x128xf32>
    %31 = arith.maximumf %27, %30 : vector<8x128xf32>
    %c0_25 = arith.constant 0 : index
    %c0_26 = arith.constant 0 : index
    %32 = vector.load %arg4[%c0_25, %c0_26] : memref<1x128xf32, #tpu.memory_space<vmem>>, vector<1x128xf32>
    %33 = vector.broadcast %32 : vector<1x128xf32> to vector<8x128xf32>
    %34 = arith.addf %31, %33 : vector<8x128xf32>
    %cst_27 = arith.constant 0.000000e+00 : f32
    %35 = vector.broadcast %cst_27 : f32 to vector<8x128xf32>
    %36 = arith.maximumf %34, %35 : vector<8x128xf32>
    %c0_28 = arith.constant 0 : index
    %c0_29 = arith.constant 0 : index
    %37 = vector.load %arg5[%c0_28, %c0_29] : memref<8x128xf32, #tpu.memory_space<vmem>>, vector<8x128xf32>
    tpu.vector_store %arg5[%c0_28, %c0_29], %36 {strides = array<i32>} : memref<8x128xf32, #tpu.memory_space<vmem>>, vector<8x128xf32>,
    return
  }
  func.func @transform_0(%arg0: i32, %arg1: i32) -> (i32, i32, i32) {
    %c0_i32 = arith.constant 0 : i32
    %c0_i32_0 = arith.constant 0 : i32
    %c0_i32_1 = arith.constant 0 : i32
    return %arg1, %c0_i32, %c0_i32_0 : i32, i32, i32
  }
  func.func @transform_1(%arg0: i32, %arg1: i32) -> (i32, i32) {
    %c0_i32 = arith.constant 0 : i32
    %c0_i32_0 = arith.constant 0 : i32
    return %c0_i32, %arg0 : i32, i32
  }
  func.func @transform_2(%arg0: i32, %arg1: i32) -> (i32, i32) {
    %c0_i32 = arith.constant 0 : i32
    %c0_i32_0 = arith.constant 0 : i32
    return %c0_i32, %arg0 : i32, i32
  }
  func.func @transform_3(%arg0: i32, %arg1: i32) -> (i32, i32) {
    %c0_i32 = arith.constant 0 : i32
    return %arg1, %arg0 : i32, i32
  }
}

</mosaic_0001>

<bundles_post_ra>
// kernel: tpu_custom_call.1
= control target key start
LH: loop header
LB: loop body
LE: loop exit
PB: predicated region body
PF: predicated region fallthrough
CT: control target
= control target key end

     0   :  { %8 = vsyncpa [#allocation3], 0  ;;  %s1352_s0 = inlined_call_operand.hbm [shape: f32[8,8,32], index: 0, kind: input, shape index: {}]   ;;  %s1353_s1 = inlined_call_operand.hbm [shape: f32[32,128], index: 1, kind: input, shape index: {}]   ;;  %s1354_s2 = inlined_call_operand.vmem [shape: f32[1,128], index: 2, kind: input, shape index: {}]   ;;  %s1355_s3 = inlined_call_operand.hbm [shape: f32[8,128], index: 3, kind: output, shape index: {}]  }
   0x1   :  { %9 = vsyncpa [#allocation6], 0 }
   0x2   :  { %10 = vsyncpa [#allocation4], 0  ;;  %s1169_s12 = smov [#allocation2]   ;;  %s1097_s16 = scalar_lea.hbm %s1352_s0, 1024 }
   0x3   :  { %s16_s13 = sshll.u32 %s1169_s12, 4  ;;  %p1098_p0 = scmp.ne.s32.totalorder %s1352_s0, %s1097_s16  ;;  %s17_s13 = int_to_ptr.vmem [resolvable:$true] %s16_s13 }
   0x4   :  { %p1101_p1 = scmp.lt.u32.totalorder %s1097_s16, %s1352_s0 }
   0x6   :  { %p1103_p2 = pnand %p1101_p1, %p1098_p0 }
   0x8   :  { %1106 = shalt.err (!%p1103_p2)
}
   0x9   :  { %s1107_s21 = scalar_lea.vmem %s17_s13, 1024  ;;  %p1112_p4 = scmp.lt.s32.totalorder %s17_s13, %s17_s13 }
   0xa   :  { %p1108_p3 = scmp.ne.s32.totalorder %s17_s13, %s1107_s21  ;;  %p1113_p5 = scmp.lt.s32.totalorder %s1107_s21, %s1107_s21 }
   0xc   :  { %p1114_p6 = por %p1113_p5, %p1112_p4 }
   0xe   :  { %p1115_p7 = pnand %p1114_p6, %p1108_p3 }
  0x10   :  { %1118 = shalt.err (!%p1115_p7)
}
  0x11   :  { %s1170_s22 = smov 128   ;;  %s1171_s23 = smov 8  }
  0x12   :  { %22 = dma.hbm_to_vmem [thread:$0]  %s1352_s0, 1024, %s17_s13, [#allocation3], %s1170_s22, %s1170_s22, %s1171_s23  }
  0x13   :  { %s1172_s26 = smov [#allocation5]   ;;  %s1119_s30 = scalar_lea.hbm %s1353_s1, 512 }
  0x14   :  { %s28_s27 = sshll.u32 %s1172_s26, 4  ;;  %p1120_p8 = scmp.ne.s32.totalorder %s1353_s1, %s1119_s30  ;;  %s29_s27 = int_to_ptr.vmem [resolvable:$true] %s28_s27 }
  0x15   :  { %p1123_p9 = scmp.lt.u32.totalorder %s1119_s30, %s1353_s1 }
  0x17   :  { %p1125_p10 = pnand %p1123_p9, %p1120_p8 }
  0x19   :  { %1128 = shalt.err (!%p1125_p10)
}
  0x1a   :  { %s1129_s8 = scalar_lea.vmem %s29_s27, 512  ;;  %p1134_p12 = scmp.lt.s32.totalorder %s29_s27, %s29_s27 }
  0x1b   :  { %p1130_p11 = scmp.ne.s32.totalorder %s29_s27, %s1129_s8  ;;  %p1135_p13 = scmp.lt.s32.totalorder %s1129_s8, %s1129_s8 }
  0x1d   :  { %p1136_p0 = por %p1135_p13, %p1134_p12 }
  0x1f   :  { %p1137_p1 = pnand %p1136_p0, %p1130_p11 }
  0x21   :  { %1140 = shalt.err (!%p1137_p1)
}
  0x22   :  { %34 = dma.hbm_to_vmem [thread:$0]  %s1353_s1, 512, %s29_s27, [#allocation6], %s1170_s22, %s1170_s22, %s1171_s23  }
  0x23   :  { %1163 = dma.done.wait [#allocation3], 1024  }
  0x24   :  { %1164 = vsyncadd [#allocation3], 4294966272 }
  0x25   :  { %1165 = dma.done.wait [#allocation6], 512  }
  0x26   :  { %1166 = vsyncadd [#allocation6], 4294966784  ;;  %v1173_v0 = vmov 0.0|0.0   ;;  %vm1174_vm0 = vmmov 0   ;;  %v1175_v1 = vmov 0.0   ;;  %vm64_vm1 = vcmask 1041409  }
  0x27   :  { %1041 = vmatprep.subr.bf16.mxu0 %v1173_v0  ;;  %1047 = vmatprep.subr.bf16.mxu1 %v1173_v0  ;;  %vm67_vm2 = vcmask 1042434   ;;  %vm70_vm3 = vcmask 1043459   ;;  %v43_v2 = vld [vmem:[#allocation5] sm:$0xff]  ;;  %v44_v3 = vld [vmem:[#allocation5 + $0x8] sm:$0xff]  ;;  %v45_v4 = vld [vmem:[#allocation5 + $0x10] sm:$0xff]  ;;  %vm73_vm4 = vcmask 1044484  }
  0x28   :  { %961 = vmatprep.mubr.msk.f32.mxu0 %vm1174_vm0, %v1175_v1  ;;  %972 = vmatprep.mubr.msk.f32.mxu1 %vm1174_vm0, %v1175_v1  ;;  %vm76_vm5 = vcmask 1045509   ;;  %vm79_vm6 = vcmask 1046534   ;;  %v1227_v5 = vpack.c.bf16 %v44_v3, %v43_v2  ;;  %v46_v6 = vld [vmem:[#allocation5 + $0x18] sm:$0xff]  ;;  %v47_v7 = vld [vmem:[#allocation2] sm:$0x1]  ;;  %vm82_vm7 = vcmask 1047559  }
  0x29   :  { %v48_v8 = vld [vmem:[#allocation2 + $0x8] sm:$0x1]  ;;  %v49_v9 = vld [vmem:[#allocation2 + $0x10] sm:$0x1]  ;;  %v50_v10 = vld [vmem:[#allocation2 + $0x18] sm:$0x1]  ;;  %v1231_v12 = vpack.c.bf16 %v46_v6, %v45_v4 }
  0x2a   :  { %v51_v11 = vld [vmem:[#allocation2 + $0x20] sm:$0x1]  ;;  %1043 = vmatpush3.bf16.msra.mxu0 %v1227_v5  ;;  %1049 = vmatpush3.bf16.msra.mxu1 %v1227_v5  ;;  %v52_v13 = vld [vmem:[#allocation2 + $0x28] sm:$0x1]  ;;  %v53_v14 = vld [vmem:[#allocation2 + $0x30] sm:$0x1] }
  0x2b   :  { %v54_v15 = vld [vmem:[#allocation2 + $0x38] sm:$0x1]  ;;  %1044 = vmatprep.subr.bf16.mxu0 %v1173_v0  ;;  %1050 = vmatprep.subr.bf16.mxu1 %v1173_v0  ;;  %v63_v16 = vrot.slane %v48_v8, 7  ;;  %v66_v17 = vrot.slane %v49_v9, 6  ;;  %v69_v18 = vrot.slane %v50_v10, 5  ;;  %vm84_vm8 = vcmask 261120  }
  0x2c   :  { %v72_v19 = vrot.slane %v51_v11, 4  ;;  %v75_v20 = vrot.slane %v52_v13, 3  ;;  %v78_v21 = vrot.slane %v53_v14, 2  ;;  %v81_v22 = vrot.slane %v54_v15, 1  ;;  %v157_v23 = vld [vmem:[#allocation2 + $0x1] sm:$0x1] }
  0x2d   :  { %v158_v24 = vld [vmem:[#allocation2 + $0x9] sm:$0x1]  ;;  %v65_v25 = vsel %vm64_vm1, %v63_v16, %v47_v7  ;;  %v159_v26 = vld [vmem:[#allocation2 + $0x11] sm:$0x1]  ;;  %v160_v27 = vld [vmem:[#allocation2 + $0x19] sm:$0x1] }
  0x2e   :  { %v161_v28 = vld [vmem:[#allocation2 + $0x21] sm:$0x1]  ;;  %1046 = vmatpush3.bf16.msra.mxu0 %v1231_v12  ;;  %1052 = vmatpush3.bf16.msra.mxu1 %v1231_v12  ;;  %v68_v29 = vsel %vm67_vm2, %v66_v17, %v65_v25  ;;  %v162_v30 = vld [vmem:[#allocation2 + $0x29] sm:$0x1]  ;;  %v163_v31 = vld [vmem:[#allocation2 + $0x31] sm:$0x1] }
  0x2f   :  { %v164_v32 = vld [vmem:[#allocation2 + $0x39] sm:$0x1]  ;;  %v71_v33 = vsel %vm70_vm3, %v69_v18, %v68_v29  ;;  %1053 = vmatprep.subr.bf16.mxu0 %v1173_v0  ;;  %v173_v34 = vrot.slane %v158_v24, 7  ;;  %v175_v35 = vrot.slane %v159_v26, 6  ;;  %v177_v36 = vrot.slane %v160_v27, 5  ;;  %1059 = vmatprep.subr.bf16.mxu1 %v1173_v0  ;;  %s1176_s11 = smov [#allocation7]  }
  0x30   :  { %v260_v37 = vld [vmem:[#allocation2 + $0x2] sm:$0x1]  ;;  %v74_v38 = vsel %vm73_vm4, %v72_v19, %v71_v33  ;;  %v179_v39 = vrot.slane %v161_v28, 4  ;;  %v181_v40 = vrot.slane %v162_v30, 3  ;;  %v183_v41 = vrot.slane %v163_v31, 2  ;;  %s894_s12 = sshll.u32 %s1176_s11, 4  ;;  %s895_s12 = int_to_ptr.vmem [resolvable:$true] %s894_s12 }
  0x31   :  { %v261_v42 = vld [vmem:[#allocation2 + $0xa] sm:$0x1]  ;;  %v77_v43 = vsel %vm76_vm5, %v75_v20, %v74_v38  ;;  %v174_v44 = vsel %vm64_vm1, %v173_v34, %v157_v23  ;;  %v185_v45 = vrot.slane %v164_v32, 1  ;;  %v262_v46 = vld [vmem:[#allocation2 + $0x12] sm:$0x1]  ;;  %s1141_s13 = scalar_lea.vmem %s895_s12, 128  ;;  %p1146_p3 = scmp.lt.s32.totalorder %s895_s12, %s895_s12 }
  0x32   :  { %v263_v47 = vld [vmem:[#allocation2 + $0x1a] sm:$0x1]  ;;  %v276_v48 = vrot.slane %v261_v42, 7  ;;  %v80_v49 = vsel %vm79_vm6, %v78_v21, %v77_v43  ;;  %v176_v50 = vsel %vm67_vm2, %v175_v35, %v174_v44  ;;  %v264_v51 = vld [vmem:[#allocation2 + $0x22] sm:$0x1]  ;;  %v278_v58 = vrot.slane %v262_v46, 6  ;;  %p1142_p2 = scmp.ne.s32.totalorder %s895_s12, %s1141_s13  ;;  %p1147_p4 = scmp.lt.s32.totalorder %s1141_s13, %s1141_s13 }
  0x33   :  { %v265_v52 = vld [vmem:[#allocation2 + $0x2a] sm:$0x1]  ;;  %v266_v53 = vld [vmem:[#allocation2 + $0x32] sm:$0x1]  ;;  %v83_v54 = vsel %vm82_vm7, %v81_v22, %v80_v49  ;;  %v178_v55 = vsel %vm70_vm3, %v177_v36, %v176_v50  ;;  %v267_v56 = vld [vmem:[#allocation2 + $0x3a] sm:$0x1] }
  0x34   :  { %v277_v57 = vsel %vm64_vm1, %v276_v48, %v260_v37  ;;  %962 = vmatmul.mubr.msk.f32.vlgmr.msra.gmra.mrb[0].mxu0 %vm84_vm8, %v83_v54  ;;  %v180_v59 = vsel %vm73_vm4, %v179_v39, %v178_v55  ;;  %v280_v60 = vrot.slane %v263_v47, 5  ;;  %v282_v61 = vrot.slane %v264_v51, 4  ;;  %v363_v63 = vld [vmem:[#allocation2 + $0x3] sm:$0x1]  ;;  %v364_v2 = vld [vmem:[#allocation2 + $0xb] sm:$0x1]  ;;  %p1148_p5 = por %p1147_p4, %p1146_p3 }
  0x35   :  { %v284_v62 = vrot.slane %v265_v52, 3  ;;  %v182_v3 = vsel %vm76_vm5, %v181_v40, %v180_v59  ;;  %1055 = vmatpush3.bf16.msra.mxu0 %v1227_v5  ;;  %983 = vmatprep.mubr.msk.f32.mxu0 %vm1174_vm0, %v1175_v1  ;;  %v279_v4 = vsel %vm67_vm2, %v278_v58, %v277_v57  ;;  %v286_v6 = vrot.slane %v266_v53, 2  ;;  %v365_v8 = vld [vmem:[#allocation2 + $0x13] sm:$0x1]  ;;  %v366_v9 = vld [vmem:[#allocation2 + $0x1b] sm:$0x1] }
  0x36   :  { %v288_v7 = vrot.slane %v267_v56, 1  ;;  %v184_v10 = vsel %vm79_vm6, %v183_v41, %v182_v3  ;;  %1056 = vmatprep.subr.bf16.mxu0 %v1173_v0  ;;  %v281_v11 = vsel %vm70_vm3, %v280_v60, %v279_v4  ;;  %v367_v13 = vld [vmem:[#allocation2 + $0x23] sm:$0x1]  ;;  %v368_v14 = vld [vmem:[#allocation2 + $0x2b] sm:$0x1]  ;;  %v379_v19 = vrot.slane %v364_v2, 7  ;;  %p1149_p6 = pnand %p1148_p5, %p1142_p2 }
  0x37   :  { %v369_v15 = vld [vmem:[#allocation2 + $0x33] sm:$0x1]  ;;  %v186_v16 = vsel %vm82_vm7, %v185_v45, %v184_v10  ;;  %v283_v17 = vsel %vm73_vm4, %v282_v61, %v281_v11  ;;  %v370_v18 = vld [vmem:[#allocation2 + $0x3b] sm:$0x1]  ;;  %v381_v20 = vrot.slane %v365_v8, 6  ;;  %v383_v22 = vrot.slane %v366_v9, 5 }
  0x38   :  { %973 = vmatmul.mubr.msk.f32.vlgmr.msra.gmra.mrb[0].mxu1 %vm84_vm8, %v186_v16  ;;  %v285_v21 = vsel %vm76_vm5, %v284_v62, %v283_v17  ;;  %v385_v23 = vrot.slane %v367_v13, 4  ;;  %v387_v24 = vrot.slane %v368_v14, 3  ;;  %v466_v25 = vld [vmem:[#allocation2 + $0x4] sm:$0x1]  ;;  %v467_v26 = vld [vmem:[#allocation2 + $0xc] sm:$0x1]  ;;  %v380_v28 = vsel %vm64_vm1, %v379_v19, %v363_v63 }
  0x39   :  { %1061 = vmatpush3.bf16.msra.mxu1 %v1227_v5  ;;  %1058 = vmatpush3.bf16.msra.mxu0 %v1231_v12  ;;  %v287_v27 = vsel %vm79_vm6, %v286_v6, %v285_v21  ;;  %v389_v29 = vrot.slane %v369_v15, 2  ;;  %v391_v30 = vrot.slane %v370_v18, 1  ;;  %v468_v31 = vld [vmem:[#allocation2 + $0x14] sm:$0x1]  ;;  %v469_v32 = vld [vmem:[#allocation2 + $0x1c] sm:$0x1]  ;;  %v382_v34 = vsel %vm67_vm2, %v381_v20, %v380_v28 }
  0x3a   :  { %1062 = vmatprep.subr.bf16.mxu1 %v1173_v0  ;;  %v289_v33 = vsel %vm82_vm7, %v288_v7, %v287_v27  ;;  %1065 = vmatprep.subr.bf16.mxu0 %v1173_v0  ;;  %v470_v35 = vld [vmem:[#allocation2 + $0x24] sm:$0x1]  ;;  %v471_v36 = vld [vmem:[#allocation2 + $0x2c] sm:$0x1]  ;;  %v472_v37 = vld [vmem:[#allocation2 + $0x34] sm:$0x1]  ;;  %v384_v38 = vsel %vm70_vm3, %v383_v22, %v382_v34 }
  0x3b   :  { %994 = vmatprep.mubr.msk.f32.mxu1 %vm1174_vm0, %v1175_v1  ;;  %v473_v39 = vld [vmem:[#allocation2 + $0x3c] sm:$0x1]  ;;  %v482_v40 = vrot.slane %v467_v26, 7  ;;  %v484_v41 = vrot.slane %v468_v31, 6  ;;  %v486_v42 = vrot.slane %v469_v32, 5  ;;  %v386_v43 = vsel %vm73_vm4, %v385_v23, %v384_v38 }
  0x3c   :  { %984 = vmatmul.mubr.msk.f32.vlgmr.msra.gmra.mrb[2].mxu0 %vm84_vm8, %v289_v33  ;;  %v488_v44 = vrot.slane %v470_v35, 4  ;;  %v490_v45 = vrot.slane %v471_v36, 3  ;;  %v569_v46 = vld [vmem:[#allocation2 + $0x5] sm:$0x1]  ;;  %v388_v47 = vsel %vm76_vm5, %v387_v24, %v386_v43  ;;  %v492_v49 = vrot.slane %v472_v37, 2 }
  0x3d   :  { %1064 = vmatpush3.bf16.msra.mxu1 %v1231_v12  ;;  %1067 = vmatpush3.bf16.msra.mxu0 %v1227_v5  ;;  %v483_v48 = vsel %vm64_vm1, %v482_v40, %v466_v25  ;;  %v494_v50 = vrot.slane %v473_v39, 1  ;;  %v570_v51 = vld [vmem:[#allocation2 + $0xd] sm:$0x1]  ;;  %v571_v52 = vld [vmem:[#allocation2 + $0x15] sm:$0x1]  ;;  %v390_v53 = vsel %vm79_vm6, %v389_v29, %v388_v47 }
  0x3e   :  { %1071 = vmatprep.subr.bf16.mxu1 %v1173_v0  ;;  %1068 = vmatprep.subr.bf16.mxu0 %v1173_v0  ;;  %v485_v54 = vsel %vm67_vm2, %v484_v41, %v483_v48  ;;  %v572_v55 = vld [vmem:[#allocation2 + $0x1d] sm:$0x1]  ;;  %v573_v56 = vld [vmem:[#allocation2 + $0x25] sm:$0x1]  ;;  %v574_v57 = vld [vmem:[#allocation2 + $0x2d] sm:$0x1]  ;;  %v392_v58 = vsel %vm82_vm7, %v391_v30, %v390_v53 }
  0x3f   :  { %1005 = vmatprep.mubr.msk.f32.mxu0 %vm1174_vm0, %v1175_v1  ;;  %v487_v59 = vsel %vm70_vm3, %v486_v42, %v485_v54  ;;  %v575_v60 = vld [vmem:[#allocation2 + $0x35] sm:$0x1]  ;;  %v576_v61 = vld [vmem:[#allocation2 + $0x3d] sm:$0x1]  ;;  %v585_v62 = vrot.slane %v570_v51, 7  ;;  %v587_v63 = vrot.slane %v571_v52, 6 }
  0x40   :  { %995 = vmatmul.mubr.msk.f32.vlgmr.msra.gmra.mrb[2].mxu1 %vm84_vm8, %v392_v58  ;;  %v489_v2 = vsel %vm73_vm4, %v488_v44, %v487_v59  ;;  %v589_v3 = vrot.slane %v572_v55, 5  ;;  %v591_v4 = vrot.slane %v573_v56, 4  ;;  %v593_v6 = vrot.slane %v574_v57, 3  ;;  %v672_v7 = vld [vmem:[#allocation2 + $0x6] sm:$0x1] }
  0x41   :  { %1073 = vmatpush3.bf16.msra.mxu1 %v1227_v5  ;;  %1070 = vmatpush3.bf16.msra.mxu0 %v1231_v12  ;;  %v491_v8 = vsel %vm76_vm5, %v490_v45, %v489_v2  ;;  %v586_v9 = vsel %vm64_vm1, %v585_v62, %v569_v46  ;;  %v595_v10 = vrot.slane %v575_v60, 2  ;;  %v597_v11 = vrot.slane %v576_v61, 1  ;;  %v673_v13 = vld [vmem:[#allocation2 + $0xe] sm:$0x1]  ;;  %v674_v14 = vld [vmem:[#allocation2 + $0x16] sm:$0x1] }
  0x42   :  { %1074 = vmatprep.subr.bf16.mxu1 %v1173_v0  ;;  %v493_v15 = vsel %vm79_vm6, %v492_v49, %v491_v8  ;;  %1077 = vmatprep.subr.bf16.mxu0 %v1173_v0  ;;  %v588_v16 = vsel %vm67_vm2, %v587_v63, %v586_v9  ;;  %v675_v17 = vld [vmem:[#allocation2 + $0x1e] sm:$0x1]  ;;  %v676_v18 = vld [vmem:[#allocation2 + $0x26] sm:$0x1]  ;;  %v677_v19 = vld [vmem:[#allocation2 + $0x2e] sm:$0x1] }
  0x43   :  { %v495_v20 = vsel %vm82_vm7, %v494_v50, %v493_v15  ;;  %1016 = vmatprep.mubr.msk.f32.mxu1 %vm1174_vm0, %v1175_v1  ;;  %v590_v21 = vsel %vm70_vm3, %v589_v3, %v588_v16  ;;  %v678_v22 = vld [vmem:[#allocation2 + $0x36] sm:$0x1]  ;;  %v679_v23 = vld [vmem:[#allocation2 + $0x3e] sm:$0x1]  ;;  %v688_v24 = vrot.slane %v673_v13, 7  ;;  %v690_v25 = vrot.slane %v674_v14, 6 }
  0x44   :  { %1006 = vmatmul.mubr.msk.f32.vlgmr.msra.gmra.mrb[4].mxu0 %vm84_vm8, %v495_v20  ;;  %v592_v26 = vsel %vm73_vm4, %v591_v4, %v590_v21  ;;  %v692_v27 = vrot.slane %v675_v17, 5  ;;  %v694_v28 = vrot.slane %v676_v18, 4  ;;  %v696_v29 = vrot.slane %v677_v19, 3  ;;  %v775_v30 = vld [vmem:[#allocation2 + $0x7] sm:$0x1] }
  0x45   :  { %1076 = vmatpush3.bf16.msra.mxu1 %v1231_v12  ;;  %1079 = vmatpush3.bf16.msra.mxu0 %v1227_v5  ;;  %v594_v31 = vsel %vm76_vm5, %v593_v6, %v592_v26  ;;  %v689_v32 = vsel %vm64_vm1, %v688_v24, %v672_v7  ;;  %v698_v33 = vrot.slane %v678_v22, 2  ;;  %v700_v34 = vrot.slane %v679_v23, 1  ;;  %v776_v35 = vld [vmem:[#allocation2 + $0xf] sm:$0x1]  ;;  %v777_v36 = vld [vmem:[#allocation2 + $0x17] sm:$0x1] }
  0x46   :  { %1083 = vmatprep.subr.bf16.mxu1 %v1173_v0  ;;  %v596_v37 = vsel %vm79_vm6, %v595_v10, %v594_v31  ;;  %1080 = vmatprep.subr.bf16.mxu0 %v1173_v0  ;;  %v691_v38 = vsel %vm67_vm2, %v690_v25, %v689_v32  ;;  %v778_v39 = vld [vmem:[#allocation2 + $0x1f] sm:$0x1]  ;;  %v779_v40 = vld [vmem:[#allocation2 + $0x27] sm:$0x1]  ;;  %v780_v41 = vld [vmem:[#allocation2 + $0x2f] sm:$0x1] }
  0x47   :  { %v598_v42 = vsel %vm82_vm7, %v597_v11, %v596_v37  ;;  %1027 = vmatprep.mubr.msk.f32.mxu0 %vm1174_vm0, %v1175_v1  ;;  %v693_v43 = vsel %vm70_vm3, %v692_v27, %v691_v38  ;;  %v781_v44 = vld [vmem:[#allocation2 + $0x37] sm:$0x1]  ;;  %v791_v45 = vrot.slane %v776_v35, 7  ;;  %v793_v46 = vrot.slane %v777_v36, 6  ;;  %v782_v48 = vld [vmem:[#allocation2 + $0x3f] sm:$0x1] }
  0x48   :  { %1017 = vmatmul.mubr.msk.f32.vlgmr.msra.gmra.mrb[4].mxu1 %vm84_vm8, %v598_v42  ;;  %v695_v47 = vsel %vm73_vm4, %v694_v28, %v693_v43  ;;  %v795_v49 = vrot.slane %v778_v39, 5  ;;  %v797_v50 = vrot.slane %v779_v40, 4  ;;  %v799_v53 = vrot.slane %v780_v41, 3  ;;  %v912_v21 = vld [vmem:[%s1354_s2] ss:$0 sm:$0xff] }
  0x49   :  { %1085 = vmatpush3.bf16.msra.mxu1 %v1227_v5  ;;  %1082 = vmatpush3.bf16.msra.mxu0 %v1231_v12  ;;  %v697_v51 = vsel %vm76_vm5, %v696_v29, %v695_v47  ;;  %v792_v52 = vsel %vm64_vm1, %v791_v45, %v775_v30  ;;  %v801_v56 = vrot.slane %v781_v44, 2  ;;  %v803_v58 = vrot.slane %v782_v48, 1 }
  0x4a   :  { %1086 = vmatprep.subr.bf16.mxu1 %v1173_v0  ;;  %v699_v54 = vsel %vm79_vm6, %v698_v33, %v697_v51  ;;  %1038 = vmatprep.mubr.msk.f32.mxu1 %vm1174_vm0, %v1175_v1  ;;  %v794_v55 = vsel %vm67_vm2, %v793_v46, %v792_v52 }
  0x4b   :  { %v701_v57 = vsel %vm82_vm7, %v700_v34, %v699_v54  ;;  %v796_v5 = vsel %vm70_vm3, %v795_v49, %v794_v55 }
  0x4c   :  { %1028 = vmatmul.mubr.msk.f32.vlgmr.msra.gmra.mrb[6].mxu0 %vm84_vm8, %v701_v57  ;;  %v798_v59 = vsel %vm73_vm4, %v797_v50, %v796_v5 }
  0x4d   :  { %1088 = vmatpush3.bf16.msra.mxu1 %v1231_v12  ;;  %v800_v0 = vsel %vm76_vm5, %v799_v53, %v798_v59 }
  0x4e   :  { %v802_v60 = vsel %vm79_vm6, %v801_v56, %v800_v0 }
  0x4f   :  { %v804_v1 = vsel %vm82_vm7, %v803_v58, %v802_v60 }
  0x50   :  { %1039 = vmatmul.mubr.msk.f32.vlgmr.msra.gmra.mrb[6].mxu1 %vm84_vm8, %v804_v1 }
 0x107   :  { %v153_v61 = vpop.f32.mrb[0].mxu0 }
 0x108   :  { %v963_v62 = vpop.f32.mrb[1].mxu0 }
 0x10b   :  { %v255_v63 = vpop.f32.mrb[0].mxu1 }
 0x10c   :  { %v259_v2 = vmax.f32 %v153_v61, %v255_v63  ;;  %v974_v3 = vpop.f32.mrb[1].mxu1 }
 0x10f   :  { %v358_v4 = vpop.f32.mrb[2].mxu0 }
 0x110   :  { %v362_v6 = vmax.f32 %v259_v2, %v358_v4  ;;  %v985_v7 = vpop.f32.mrb[3].mxu0 }
 0x113   :  { %v461_v8 = vpop.f32.mrb[2].mxu1 }
 0x114   :  { %v465_v9 = vmax.f32 %v362_v6, %v461_v8  ;;  %v996_v10 = vpop.f32.mrb[3].mxu1 }
 0x117   :  { %v564_v12 = vpop.f32.mrb[4].mxu0 }
 0x118   :  { %v568_v11 = vmax.f32 %v465_v9, %v564_v12  ;;  %v1007_v13 = vpop.f32.mrb[5].mxu0 }
 0x11b   :  { %v667_v14 = vpop.f32.mrb[4].mxu1 }
 0x11c   :  { %v671_v15 = vmax.f32 %v568_v11, %v667_v14  ;;  %v1018_v16 = vpop.f32.mrb[5].mxu1 }
 0x11f   :  { %v770_v17 = vpop.f32.mrb[6].mxu0 }
 0x120   :  { %v774_v18 = vmax.f32 %v671_v15, %v770_v17  ;;  %v1029_v19 = vpop.f32.mrb[7].mxu0 }
 0x123   :  { %v873_v20 = vpop.f32.mrb[6].mxu1 }
 0x124   :  { %v877_v22 = vmax.f32 %v774_v18, %v873_v20  ;;  %v1040_v23 = vpop.f32.mrb[7].mxu1 }
 0x126   :  { %v885_v24 = vadd.f32 %v912_v21, %v877_v22 }
 0x128   :  { %v886_v25 = vmax.f32 %v885_v24, 0.0 }
 0x12a   :  { %887 = vst [vmem:[#allocation7] sm:$0xff] %v886_v25 }
 0x12b   :  { %1152 = shalt.err (!%p1149_p6)
}
 0x12c   :  { %s1153_s16 = scalar_lea.hbm %s1355_s3, 128 }
 0x12d   :  { %p1154_p7 = scmp.ne.s32.totalorder %s1355_s3, %s1153_s16  ;;  %p1157_p8 = scmp.lt.u32.totalorder %s1153_s16, %s1355_s3 }
 0x12f   :  { %p1159_p9 = pnand %p1157_p8, %p1154_p7 }
 0x131   :  { %1162 = shalt.err (!%p1159_p9)
}
 0x132   :  { %897 = dma.vmem_to_hbm [thread:$0]  %s895_s12, 128, %s1355_s3, [#allocation4]  }
 0x133   :  { %1167 = dma.done.wait [#allocation4], 128  }
 0x134   :  { %1168 = vsyncadd [#allocation4], 4294967168 }
 0x135   :  { %901 = vsyncpa [#allocation3], 1 }
 0x136   :  { %902 = vsyncpa [#allocation6], 1 }
 0x137   :  { %903 = vsyncpa [#allocation4], 1 }

// kernel: tpu_custom_call.1
= control target key start
LH: loop header
LB: loop body
LE: loop exit
PB: predicated region body
PF: predicated region fallthrough
CT: control target
= control target key end

     0   :  { %8 = vsyncpa [#allocation3], 0  ;;  %s1352_s0 = inlined_call_operand.hbm [shape: f32[8,8,32], index: 0, kind: input, shape index: {}]   ;;  %s1353_s1 = inlined_call_operand.hbm [shape: f32[32,128], index: 1, kind: input, shape index: {}]   ;;  %s1354_s2 = inlined_call_operand.vmem [shape: f32[1,128], index: 2, kind: input, shape index: {}]   ;;  %s1355_s3 = inlined_call_operand.hbm [shape: f32[8,128], index: 3, kind: output, shape index: {}]  }
   0x1   :  { %9 = vsyncpa [#allocation6], 0 }
   0x2   :  { %10 = vsyncpa [#allocation4], 0  ;;  %s1169_s12 = smov [#allocation2]   ;;  %s1097_s16 = scalar_lea.hbm %s1352_s0, 1024 }
   0x3   :  { %s16_s13 = sshll.u32 %s1169_s12, 4  ;;  %p1098_p0 = scmp.ne.s32.totalorder %s1352_s0, %s1097_s16  ;;  %s17_s13 = int_to_ptr.vmem [resolvable:$true] %s16_s13 }
   0x4   :  { %p1101_p1 = scmp.lt.u32.totalorder %s1097_s16, %s1352_s0 }
   0x6   :  { %p1103_p2 = pnand %p1101_p1, %p1098_p0 }
   0x8   :  { %1106 = shalt.err (!%p1103_p2)
}
   0x9   :  { %s1107_s21 = scalar_lea.vmem %s17_s13, 1024  ;;  %p1112_p4 = scmp.lt.s32.totalorder %s17_s13, %s17_s13 }
   0xa   :  { %p1108_p3 = scmp.ne.s32.totalorder %s17_s13, %s1107_s21  ;;  %p1113_p5 = scmp.lt.s32.totalorder %s1107_s21, %s1107_s21 }
   0xc   :  { %p1114_p6 = por %p1113_p5, %p1112_p4 }
   0xe   :  { %p1115_p7 = pnand %p1114_p6, %p1108_p3 }
  0x10   :  { %1118 = shalt.err (!%p1115_p7)
}
  0x11   :  { %s1170_s22 = smov 128   ;;  %s1171_s23 = smov 8  }
  0x12   :  { %22 = dma.hbm_to_vmem [thread:$0]  %s1352_s0, 1024, %s17_s13, [#allocation3], %s1170_s22, %s1170_s22, %s1171_s23  }
  0x13   :  { %s1172_s26 = smov [#allocation5]   ;;  %s1119_s30 = scalar_lea.hbm %s1353_s1, 512 }
  0x14   :  { %s28_s27 = sshll.u32 %s1172_s26, 4  ;;  %p1120_p8 = scmp.ne.s32.totalorder %s1353_s1, %s1119_s30  ;;  %s29_s27 = int_to_ptr.vmem [resolvable:$true] %s28_s27 }
  0x15   :  { %p1123_p9 = scmp.lt.u32.totalorder %s1119_s30, %s1353_s1 }
  0x17   :  { %p1125_p10 = pnand %p1123_p9, %p1120_p8 }
  0x19   :  { %1128 = shalt.err (!%p1125_p10)
}
  0x1a   :  { %s1129_s8 = scalar_lea.vmem %s29_s27, 512  ;;  %p1134_p12 = scmp.lt.s32.totalorder %s29_s27, %s29_s27 }
  0x1b   :  { %p1130_p11 = scmp.ne.s32.totalorder %s29_s27, %s1129_s8  ;;  %p1135_p13 = scmp.lt.s32.totalorder %s1129_s8, %s1129_s8 }
  0x1d   :  { %p1136_p0 = por %p1135_p13, %p1134_p12 }
  0x1f   :  { %p1137_p1 = pnand %p1136_p0, %p1130_p11 }
  0x21   :  { %1140 = shalt.err (!%p1137_p1)
}
  0x22   :  { %34 = dma.hbm_to_vmem [thread:$0]  %s1353_s1, 512, %s29_s27, [#allocation6], %s1170_s22, %s1170_s22, %s1171_s23  }
  0x23   :  { %1163 = dma.done.wait [#allocation3], 1024  }
  0x24   :  { %1164 = vsyncadd [#allocation3], 4294966272 }
  0x25   :  { %1165 = dma.done.wait [#allocation6], 512  }
  0x26   :  { %1166 = vsyncadd [#allocation6], 4294966784  ;;  %v1173_v0 = vmov 0.0|0.0   ;;  %vm1174_vm0 = vmmov 0   ;;  %v1175_v1 = vmov 0.0   ;;  %vm64_vm1 = vcmask 1041409  }
  0x27   :  { %1041 = vmatprep.subr.bf16.mxu0 %v1173_v0  ;;  %1047 = vmatprep.subr.bf16.mxu1 %v1173_v0  ;;  %vm67_vm2 = vcmask 1042434   ;;  %vm70_vm3 = vcmask 1043459   ;;  %v43_v2 = vld [vmem:[#allocation5] sm:$0xff]  ;;  %v44_v3 = vld [vmem:[#allocation5 + $0x8] sm:$0xff]  ;;  %v45_v4 = vld [vmem:[#allocation5 + $0x10] sm:$0xff]  ;;  %vm73_vm4 = vcmask 1044484  }
  0x28   :  { %961 = vmatprep.mubr.msk.f32.mxu0 %vm1174_vm0, %v1175_v1  ;;  %972 = vmatprep.mubr.msk.f32.mxu1 %vm1174_vm0, %v1175_v1  ;;  %vm76_vm5 = vcmask 1045509   ;;  %vm79_vm6 = vcmask 1046534   ;;  %v1227_v5 = vpack.c.bf16 %v44_v3, %v43_v2  ;;  %v46_v6 = vld [vmem:[#allocation5 + $0x18] sm:$0xff]  ;;  %v47_v7 = vld [vmem:[#allocation2] sm:$0x1]  ;;  %vm82_vm7 = vcmask 1047559  }
  0x29   :  { %v48_v8 = vld [vmem:[#allocation2 + $0x8] sm:$0x1]  ;;  %v49_v9 = vld [vmem:[#allocation2 + $0x10] sm:$0x1]  ;;  %v50_v10 = vld [vmem:[#allocation2 + $0x18] sm:$0x1]  ;;  %v1231_v12 = vpack.c.bf16 %v46_v6, %v45_v4 }
  0x2a   :  { %v51_v11 = vld [vmem:[#allocation2 + $0x20] sm:$0x1]  ;;  %1043 = vmatpush3.bf16.msra.mxu0 %v1227_v5  ;;  %1049 = vmatpush3.bf16.msra.mxu1 %v1227_v5  ;;  %v52_v13 = vld [vmem:[#allocation2 + $0x28] sm:$0x1]  ;;  %v53_v14 = vld [vmem:[#allocation2 + $0x30] sm:$0x1] }
  0x2b   :  { %v54_v15 = vld [vmem:[#allocation2 + $0x38] sm:$0x1]  ;;  %1044 = vmatprep.subr.bf16.mxu0 %v1173_v0  ;;  %1050 = vmatprep.subr.bf16.mxu1 %v1173_v0  ;;  %v63_v16 = vrot.slane %v48_v8, 7  ;;  %v66_v17 = vrot.slane %v49_v9, 6  ;;  %v69_v18 = vrot.slane %v50_v10, 5  ;;  %vm84_vm8 = vcmask 261120  }
  0x2c   :  { %v72_v19 = vrot.slane %v51_v11, 4  ;;  %v75_v20 = vrot.slane %v52_v13, 3  ;;  %v78_v21 = vrot.slane %v53_v14, 2  ;;  %v81_v22 = vrot.slane %v54_v15, 1  ;;  %v157_v23 = vld [vmem:[#allocation2 + $0x1] sm:$0x1] }
  0x2d   :  { %v158_v24 = vld [vmem:[#allocation2 + $0x9] sm:$0x1]  ;;  %v65_v25 = vsel %vm64_vm1, %v63_v16, %v47_v7  ;;  %v159_v26 = vld [vmem:[#allocation2 + $0x11] sm:$0x1]  ;;  %v160_v27 = vld [vmem:[#allocation2 + $0x19] sm:$0x1] }
  0x2e   :  { %v161_v28 = vld [vmem:[#allocation2 + $0x21] sm:$0x1]  ;;  %1046 = vmatpush3.bf16.msra.mxu0 %v1231_v12  ;;  %1052 = vmatpush3.bf16.msra.mxu1 %v1231_v12  ;;  %v68_v29 = vsel %vm67_vm2, %v66_v17, %v65_v25  ;;  %v162_v30 = vld [vmem:[#allocation2 + $0x29] sm:$0x1]  ;;  %v163_v31 = vld [vmem:[#allocation2 + $0x31] sm:$0x1] }
  0x2f   :  { %v164_v32 = vld [vmem:[#allocation2 + $0x39] sm:$0x1]  ;;  %v71_v33 = vsel %vm70_vm3, %v69_v18, %v68_v29  ;;  %1053 = vmatprep.subr.bf16.mxu0 %v1173_v0  ;;  %v173_v34 = vrot.slane %v158_v24, 7  ;;  %v175_v35 = vrot.slane %v159_v26, 6  ;;  %v177_v36 = vrot.slane %v160_v27, 5  ;;  %1059 = vmatprep.subr.bf16.mxu1 %v1173_v0  ;;  %s1176_s11 = smov [#allocation7]  }
  0x30   :  { %v260_v37 = vld [vmem:[#allocation2 + $0x2] sm:$0x1]  ;;  %v74_v38 = vsel %vm73_vm4, %v72_v19, %v71_v33  ;;  %v179_v39 = vrot.slane %v161_v28, 4  ;;  %v181_v40 = vrot.slane %v162_v30, 3  ;;  %v183_v41 = vrot.slane %v163_v31, 2  ;;  %s894_s12 = sshll.u32 %s1176_s11, 4  ;;  %s895_s12 = int_to_ptr.vmem [resolvable:$true] %s894_s12 }
  0x31   :  { %v261_v42 = vld [vmem:[#allocation2 + $0xa] sm:$0x1]  ;;  %v77_v43 = vsel %vm76_vm5, %v75_v20, %v74_v38  ;;  %v174_v44 = vsel %vm64_vm1, %v173_v34, %v157_v23  ;;  %v185_v45 = vrot.slane %v164_v32, 1  ;;  %v262_v46 = vld [vmem:[#allocation2 + $0x12] sm:$0x1]  ;;  %s1141_s13 = scalar_lea.vmem %s895_s12, 128  ;;  %p1146_p3 = scmp.lt.s32.totalorder %s895_s12, %s895_s12 }
  0x32   :  { %v263_v47 = vld [vmem:[#allocation2 + $0x1a] sm:$0x1]  ;;  %v276_v48 = vrot.slane %v261_v42, 7  ;;  %v80_v49 = vsel %vm79_vm6, %v78_v21, %v77_v43  ;;  %v176_v50 = vsel %vm67_vm2, %v175_v35, %v174_v44  ;;  %v264_v51 = vld [vmem:[#allocation2 + $0x22] sm:$0x1]  ;;  %v278_v58 = vrot.slane %v262_v46, 6  ;;  %p1142_p2 = scmp.ne.s32.totalorder %s895_s12, %s1141_s13  ;;  %p1147_p4 = scmp.lt.s32.totalorder %s1141_s13, %s1141_s13 }
  0x33   :  { %v265_v52 = vld [vmem:[#allocation2 + $0x2a] sm:$0x1]  ;;  %v266_v53 = vld [vmem:[#allocation2 + $0x32] sm:$0x1]  ;;  %v83_v54 = vsel %vm82_vm7, %v81_v22, %v80_v49  ;;  %v178_v55 = vsel %vm70_vm3, %v177_v36, %v176_v50  ;;  %v267_v56 = vld [vmem:[#allocation2 + $0x3a] sm:$0x1] }
  0x34   :  { %v277_v57 = vsel %vm64_vm1, %v276_v48, %v260_v37  ;;  %962 = vmatmul.mubr.msk.f32.vlgmr.msra.gmra.mrb[0].mxu0 %vm84_vm8, %v83_v54  ;;  %v180_v59 = vsel %vm73_vm4, %v179_v39, %v178_v55  ;;  %v280_v60 = vrot.slane %v263_v47, 5  ;;  %v282_v61 = vrot.slane %v264_v51, 4  ;;  %v363_v63 = vld [vmem:[#allocation2 + $0x3] sm:$0x1]  ;;  %v364_v2 = vld [vmem:[#allocation2 + $0xb] sm:$0x1]  ;;  %p1148_p5 = por %p1147_p4, %p1146_p3 }
  0x35   :  { %v284_v62 = vrot.slane %v265_v52, 3  ;;  %v182_v3 = vsel %vm76_vm5, %v181_v40, %v180_v59  ;;  %1055 = vmatpush3.bf16.msra.mxu0 %v1227_v5  ;;  %983 = vmatprep.mubr.msk.f32.mxu0 %vm1174_vm0, %v1175_v1  ;;  %v279_v4 = vsel %vm67_vm2, %v278_v58, %v277_v57  ;;  %v286_v6 = vrot.slane %v266_v53, 2  ;;  %v365_v8 = vld [vmem:[#allocation2 + $0x13] sm:$0x1]  ;;  %v366_v9 = vld [vmem:[#allocation2 + $0x1b] sm:$0x1] }
  0x36   :  { %v288_v7 = vrot.slane %v267_v56, 1  ;;  %v184_v10 = vsel %vm79_vm6, %v183_v41, %v182_v3  ;;  %1056 = vmatprep.subr.bf16.mxu0 %v1173_v0  ;;  %v281_v11 = vsel %vm70_vm3, %v280_v60, %v279_v4  ;;  %v367_v13 = vld [vmem:[#allocation2 + $0x23] sm:$0x1]  ;;  %v368_v14 = vld [vmem:[#allocation2 + $0x2b] sm:$0x1]  ;;  %v379_v19 = vrot.slane %v364_v2, 7  ;;  %p1149_p6 = pnand %p1148_p5, %p1142_p2 }
  0x37   :  { %v369_v15 = vld [vmem:[#allocation2 + $0x33] sm:$0x1]  ;;  %v186_v16 = vsel %vm82_vm7, %v185_v45, %v184_v10  ;;  %v283_v17 = vsel %vm73_vm4, %v282_v61, %v281_v11  ;;  %v370_v18 = vld [vmem:[#allocation2 + $0x3b] sm:$0x1]  ;;  %v381_v20 = vrot.slane %v365_v8, 6  ;;  %v383_v22 = vrot.slane %v366_v9, 5 }
  0x38   :  { %973 = vmatmul.mubr.msk.f32.vlgmr.msra.gmra.mrb[0].mxu1 %vm84_vm8, %v186_v16  ;;  %v285_v21 = vsel %vm76_vm5, %v284_v62, %v283_v17  ;;  %v385_v23 = vrot.slane %v367_v13, 4  ;;  %v387_v24 = vrot.slane %v368_v14, 3  ;;  %v466_v25 = vld [vmem:[#allocation2 + $0x4] sm:$0x1]  ;;  %v467_v26 = vld [vmem:[#allocation2 + $0xc] sm:$0x1]  ;;  %v380_v28 = vsel %vm64_vm1, %v379_v19, %v363_v63 }
  0x39   :  { %1061 = vmatpush3.bf16.msra.mxu1 %v1227_v5  ;;  %1058 = vmatpush3.bf16.msra.mxu0 %v1231_v12  ;;  %v287_v27 = vsel %vm79_vm6, %v286_v6, %v285_v21  ;;  %v389_v29 = vrot.slane %v369_v15, 2  ;;  %v391_v30 = vrot.slane %v370_v18, 1  ;;  %v468_v31 = vld [vmem:[#allocation2 + $0x14] sm:$0x1]  ;;  %v469_v32 = vld [vmem:[#allocation2 + $0x1c] sm:$0x1]  ;;  %v382_v34 = vsel %vm67_vm2, %v381_v20, %v380_v28 }
  0x3a   :  { %1062 = vmatprep.subr.bf16.mxu1 %v1173_v0  ;;  %v289_v33 = vsel %vm82_vm7, %v288_v7, %v287_v27  ;;  %1065 = vmatprep.subr.bf16.mxu0 %v1173_v0  ;;  %v470_v35 = vld [vmem:[#allocation2 + $0x24] sm:$0x1]  ;;  %v471_v36 = vld [vmem:[#allocation2 + $0x2c] sm:$0x1]  ;;  %v472_v37 = vld [vmem:[#allocation2 + $0x34] sm:$0x1]  ;;  %v384_v38 = vsel %vm70_vm3, %v383_v22, %v382_v34 }
  0x3b   :  { %994 = vmatprep.mubr.msk.f32.mxu1 %vm1174_vm0, %v1175_v1  ;;  %v473_v39 = vld [vmem:[#allocation2 + $0x3c] sm:$0x1]  ;;  %v482_v40 = vrot.slane %v467_v26, 7  ;;  %v484_v41 = vrot.slane %v468_v31, 6  ;;  %v486_v42 = vrot.slane %v469_v32, 5  ;;  %v386_v43 = vsel %vm73_vm4, %v385_v23, %v384_v38 }
  0x3c   :  { %984 = vmatmul.mubr.msk.f32.vlgmr.msra.gmra.mrb[2].mxu0 %vm84_vm8, %v289_v33  ;;  %v488_v44 = vrot.slane %v470_v35, 4  ;;  %v490_v45 = vrot.slane %v471_v36, 3  ;;  %v569_v46 = vld [vmem:[#allocation2 + $0x5] sm:$0x1]  ;;  %v388_v47 = vsel %vm76_vm5, %v387_v24, %v386_v43  ;;  %v492_v49 = vrot.slane %v472_v37, 2 }
  0x3d   :  { %1064 = vmatpush3.bf16.msra.mxu1 %v1231_v12  ;;  %1067 = vmatpush3.bf16.msra.mxu0 %v1227_v5  ;;  %v483_v48 = vsel %vm64_vm1, %v482_v40, %v466_v25  ;;  %v494_v50 = vrot.slane %v473_v39, 1  ;;  %v570_v51 = vld [vmem:[#allocation2 + $0xd] sm:$0x1]  ;;  %v571_v52 = vld [vmem:[#allocation2 + $0x15] sm:$0x1]  ;;  %v390_v53 = vsel %vm79_vm6, %v389_v29, %v388_v47 }
  0x3e   :  { %1071 = vmatprep.subr.bf16.mxu1 %v1173_v0  ;;  %1068 = vmatprep.subr.bf16.mxu0 %v1173_v0  ;;  %v485_v54 = vsel %vm67_vm2, %v484_v41, %v483_v48  ;;  %v572_v55 = vld [vmem:[#allocation2 + $0x1d] sm:$0x1]  ;;  %v573_v56 = vld [vmem:[#allocation2 + $0x25] sm:$0x1]  ;;  %v574_v57 = vld [vmem:[#allocation2 + $0x2d] sm:$0x1]  ;;  %v392_v58 = vsel %vm82_vm7, %v391_v30, %v390_v53 }
  0x3f   :  { %1005 = vmatprep.mubr.msk.f32.mxu0 %vm1174_vm0, %v1175_v1  ;;  %v487_v59 = vsel %vm70_vm3, %v486_v42, %v485_v54  ;;  %v575_v60 = vld [vmem:[#allocation2 + $0x35] sm:$0x1]  ;;  %v576_v61 = vld [vmem:[#allocation2 + $0x3d] sm:$0x1]  ;;  %v585_v62 = vrot.slane %v570_v51, 7  ;;  %v587_v63 = vrot.slane %v571_v52, 6 }
  0x40   :  { %995 = vmatmul.mubr.msk.f32.vlgmr.msra.gmra.mrb[2].mxu1 %vm84_vm8, %v392_v58  ;;  %v489_v2 = vsel %vm73_vm4, %v488_v44, %v487_v59  ;;  %v589_v3 = vrot.slane %v572_v55, 5  ;;  %v591_v4 = vrot.slane %v573_v56, 4  ;;  %v593_v6 = vrot.slane %v574_v57, 3  ;;  %v672_v7 = vld [vmem:[#allocation2 + $0x6] sm:$0x1] }
  0x41   :  { %1073 = vmatpush3.bf16.msra.mxu1 %v1227_v5  ;;  %1070 = vmatpush3.bf16.msra.mxu0 %v1231_v12  ;;  %v491_v8 = vsel %vm76_vm5, %v490_v45, %v489_v2  ;;  %v586_v9 = vsel %vm64_vm1, %v585_v62, %v569_v46  ;;  %v595_v10 = vrot.slane %v575_v60, 2  ;;  %v597_v11 = vrot.slane %v576_v61, 1  ;;  %v673_v13 = vld [vmem:[#allocation2 + $0xe] sm:$0x1]  ;;  %v674_v14 = vld [vmem:[#allocation2 + $0x16] sm:$0x1] }
  0x42   :  { %1074 = vmatprep.subr.bf16.mxu1 %v1173_v0  ;;  %v493_v15 = vsel %vm79_vm6, %v492_v49, %v491_v8  ;;  %1077 = vmatprep.subr.bf16.mxu0 %v1173_v0  ;;  %v588_v16 = vsel %vm67_vm2, %v587_v63, %v586_v9  ;;  %v675_v17 = vld [vmem:[#allocation2 + $0x1e] sm:$0x1]  ;;  %v676_v18 = vld [vmem:[#allocation2 + $0x26] sm:$0x1]  ;;  %v677_v19 = vld [vmem:[#allocation2 + $0x2e] sm:$0x1] }
  0x43   :  { %v495_v20 = vsel %vm82_vm7, %v494_v50, %v493_v15  ;;  %1016 = vmatprep.mubr.msk.f32.mxu1 %vm1174_vm0, %v1175_v1  ;;  %v590_v21 = vsel %vm70_vm3, %v589_v3, %v588_v16  ;;  %v678_v22 = vld [vmem:[#allocation2 + $0x36] sm:$0x1]  ;;  %v679_v23 = vld [vmem:[#allocation2 + $0x3e] sm:$0x1]  ;;  %v688_v24 = vrot.slane %v673_v13, 7  ;;  %v690_v25 = vrot.slane %v674_v14, 6 }
  0x44   :  { %1006 = vmatmul.mubr.msk.f32.vlgmr.msra.gmra.mrb[4].mxu0 %vm84_vm8, %v495_v20  ;;  %v592_v26 = vsel %vm73_vm4, %v591_v4, %v590_v21  ;;  %v692_v27 = vrot.slane %v675_v17, 5  ;;  %v694_v28 = vrot.slane %v676_v18, 4  ;;  %v696_v29 = vrot.slane %v677_v19, 3  ;;  %v775_v30 = vld [vmem:[#allocation2 + $0x7] sm:$0x1] }
  0x45   :  { %1076 = vmatpush3.bf16.msra.mxu1 %v1231_v12  ;;  %1079 = vmatpush3.bf16.msra.mxu0 %v1227_v5  ;;  %v594_v31 = vsel %vm76_vm5, %v593_v6, %v592_v26  ;;  %v689_v32 = vsel %vm64_vm1, %v688_v24, %v672_v7  ;;  %v698_v33 = vrot.slane %v678_v22, 2  ;;  %v700_v34 = vrot.slane %v679_v23, 1  ;;  %v776_v35 = vld [vmem:[#allocation2 + $0xf] sm:$0x1]  ;;  %v777_v36 = vld [vmem:[#allocation2 + $0x17] sm:$0x1] }
  0x46   :  { %1083 = vmatprep.subr.bf16.mxu1 %v1173_v0  ;;  %v596_v37 = vsel %vm79_vm6, %v595_v10, %v594_v31  ;;  %1080 = vmatprep.subr.bf16.mxu0 %v1173_v0  ;;  %v691_v38 = vsel %vm67_vm2, %v690_v25, %v689_v32  ;;  %v778_v39 = vld [vmem:[#allocation2 + $0x1f] sm:$0x1]  ;;  %v779_v40 = vld [vmem:[#allocation2 + $0x27] sm:$0x1]  ;;  %v780_v41 = vld [vmem:[#allocation2 + $0x2f] sm:$0x1] }
  0x47   :  { %v598_v42 = vsel %vm82_vm7, %v597_v11, %v596_v37  ;;  %1027 = vmatprep.mubr.msk.f32.mxu0 %vm1174_vm0, %v1175_v1  ;;  %v693_v43 = vsel %vm70_vm3, %v692_v27, %v691_v38  ;;  %v781_v44 = vld [vmem:[#allocation2 + $0x37] sm:$0x1]  ;;  %v791_v45 = vrot.slane %v776_v35, 7  ;;  %v793_v46 = vrot.slane %v777_v36, 6  ;;  %v782_v48 = vld [vmem:[#allocation2 + $0x3f] sm:$0x1] }
  0x48   :  { %1017 = vmatmul.mubr.msk.f32.vlgmr.msra.gmra.mrb[4].mxu1 %vm84_vm8, %v598_v42  ;;  %v695_v47 = vsel %vm73_vm4, %v694_v28, %v693_v43  ;;  %v795_v49 = vrot.slane %v778_v39, 5  ;;  %v797_v50 = vrot.slane %v779_v40, 4  ;;  %v799_v53 = vrot.slane %v780_v41, 3  ;;  %v912_v21 = vld [vmem:[%s1354_s2] ss:$0 sm:$0xff] }
  0x49   :  { %1085 = vmatpush3.bf16.msra.mxu1 %v1227_v5  ;;  %1082 = vmatpush3.bf16.msra.mxu0 %v1231_v12  ;;  %v697_v51 = vsel %vm76_vm5, %v696_v29, %v695_v47  ;;  %v792_v52 = vsel %vm64_vm1, %v791_v45, %v775_v30  ;;  %v801_v56 = vrot.slane %v781_v44, 2  ;;  %v803_v58 = vrot.slane %v782_v48, 1 }
  0x4a   :  { %1086 = vmatprep.subr.bf16.mxu1 %v1173_v0  ;;  %v699_v54 = vsel %vm79_vm6, %v698_v33, %v697_v51  ;;  %1038 = vmatprep.mubr.msk.f32.mxu1 %vm1174_vm0, %v1175_v1  ;;  %v794_v55 = vsel %vm67_vm2, %v793_v46, %v792_v52 }
  0x4b   :  { %v701_v57 = vsel %vm82_vm7, %v700_v34, %v699_v54  ;;  %v796_v5 = vsel %vm70_vm3, %v795_v49, %v794_v55 }
  0x4c   :  { %1028 = vmatmul.mubr.msk.f32.vlgmr.msra.gmra.mrb[6].mxu0 %vm84_vm8, %v701_v57  ;;  %v798_v59 = vsel %vm73_vm4, %v797_v50, %v796_v5 }
  0x4d   :  { %1088 = vmatpush3.bf16.msra.mxu1 %v1231_v12  ;;  %v800_v0 = vsel %vm76_vm5, %v799_v53, %v798_v59 }
  0x4e   :  { %v802_v60 = vsel %vm79_vm6, %v801_v56, %v800_v0 }
  0x4f   :  { %v804_v1 = vsel %vm82_vm7, %v803_v58, %v802_v60 }
  0x50   :  { %1039 = vmatmul.mubr.msk.f32.vlgmr.msra.gmra.mrb[6].mxu1 %vm84_vm8, %v804_v1 }
 0x107   :  { %v153_v61 = vpop.f32.mrb[0].mxu0 }
 0x108   :  { %v963_v62 = vpop.f32.mrb[1].mxu0 }
 0x10b   :  { %v255_v63 = vpop.f32.mrb[0].mxu1 }
 0x10c   :  { %v259_v2 = vmax.f32 %v153_v61, %v255_v63  ;;  %v974_v3 = vpop.f32.mrb[1].mxu1 }
 0x10f   :  { %v358_v4 = vpop.f32.mrb[2].mxu0 }
 0x110   :  { %v362_v6 = vmax.f32 %v259_v2, %v358_v4  ;;  %v985_v7 = vpop.f32.mrb[3].mxu0 }
 0x113   :  { %v461_v8 = vpop.f32.mrb[2].mxu1 }
 0x114   :  { %v465_v9 = vmax.f32 %v362_v6, %v461_v8  ;;  %v996_v10 = vpop.f32.mrb[3].mxu1 }
 0x117   :  { %v564_v12 = vpop.f32.mrb[4].mxu0 }
 0x118   :  { %v568_v11 = vmax.f32 %v465_v9, %v564_v12  ;;  %v1007_v13 = vpop.f32.mrb[5].mxu0 }
 0x11b   :  { %v667_v14 = vpop.f32.mrb[4].mxu1 }
 0x11c   :  { %v671_v15 = vmax.f32 %v568_v11, %v667_v14  ;;  %v1018_v16 = vpop.f32.mrb[5].mxu1 }
 0x11f   :  { %v770_v17 = vpop.f32.mrb[6].mxu0 }
 0x120   :  { %v774_v18 = vmax.f32 %v671_v15, %v770_v17  ;;  %v1029_v19 = vpop.f32.mrb[7].mxu0 }
 0x123   :  { %v873_v20 = vpop.f32.mrb[6].mxu1 }
 0x124   :  { %v877_v22 = vmax.f32 %v774_v18, %v873_v20  ;;  %v1040_v23 = vpop.f32.mrb[7].mxu1 }
 0x126   :  { %v885_v24 = vadd.f32 %v912_v21, %v877_v22 }
 0x128   :  { %v886_v25 = vmax.f32 %v885_v24, 0.0 }
 0x12a   :  { %887 = vst [vmem:[#allocation7] sm:$0xff] %v886_v25 }
 0x12b   :  { %1152 = shalt.err (!%p1149_p6)
}
 0x12c   :  { %s1153_s16 = scalar_lea.hbm %s1355_s3, 128 }
 0x12d   :  { %p1154_p7 = scmp.ne.s32.totalorder %s1355_s3, %s1153_s16  ;;  %p1157_p8 = scmp.lt.u32.totalorder %s1153_s16, %s1355_s3 }
 0x12f   :  { %p1159_p9 = pnand %p1157_p8, %p1154_p7 }
 0x131   :  { %1162 = shalt.err (!%p1159_p9)
}
 0x132   :  { %897 = dma.vmem_to_hbm [thread:$0]  %s895_s12, 128, %s1355_s3, [#allocation4]  }
 0x133   :  { %1167 = dma.done.wait [#allocation4], 128  }
 0x134   :  { %1168 = vsyncadd [#allocation4], 4294967168 }
 0x135   :  { %901 = vsyncpa [#allocation3], 1 }
 0x136   :  { %902 = vsyncpa [#allocation6], 1 }
 0x137   :  { %903 = vsyncpa [#allocation4], 1 }

</bundles_post_ra>
